<compile_context>
chip_gen: v7x
topology: tpu7x:2x2x1
jax: 0.10.0
libtpu: 0.0.40
codegen_flags: <defaults>
</compile_context>

<pallas_src>
import jax
import jax.numpy as jnp
from jax.experimental import pallas as pl
from jax.experimental.pallas import tpu as pltpu

LANE = 128
SUBLANE_BF16 = 16          # bf16 packs 16 rows per physical (16, 128) tile
NEG_BIG = -1.0e30          # kills padded logit columns in the f32 softmax
RESIDENT_1BUF_BYTES = 1 << 20  # single-buffer resident operands >= 1 MiB


def _round_up(n, m):
    return ((n + m - 1) // m) * m


def _pad_feature(d):
    # 128-lane alignment; true dims > 128 align to 256 to fill the 2x256x256
    # MXU on v6e/v7x (128 already matches v5e's 128x128 MXU, and padding a
    # sub-128 dim to 256 would only add zero-FLOPs).
    return _round_up(d, 256) if d > 128 else LANE


def _buf_factor(nbytes):
    # Default BlockSpec pipelining double-buffers every input; large resident
    # operands are requested single-buffered (see _resident_spec).
    return 1 if (nbytes >= RESIDENT_1BUF_BYTES and hasattr(pl, "Buffered")) else 2


def _resident_spec(shape, nbytes):
    """BlockSpec for an operand whose block is identical for every grid step."""
    index_map = lambda i: (0,) * len(shape)
    if nbytes >= RESIDENT_1BUF_BYTES and hasattr(pl, "Buffered"):
        # Resident weights don't need double-buffering; Buffered(1) halves
        # their VMEM footprint (important headroom on v7x's 64 MiB VMEM).
        return pl.BlockSpec(shape, index_map, pipeline_mode=pl.Buffered(1))
    return pl.BlockSpec(shape, index_map)


def mlp_kernel(x_ref, w1_ref, b1_ref, w2_ref, b2_ref, o_ref):
    # fc1: bf16 MXU matmul with f32 accumulation; bias + ReLU epilogue in f32
    # (v5e has no bf16 VPU/EUP, so the elementwise path stays f32 everywhere).
    h = jnp.dot(x_ref[...], w1_ref[...], preferred_element_type=jnp.float32)
    h = jnp.maximum(h + b1_ref[...], 0.0)
    # fc2: padded output columns carry bias = -1e30 so exp() underflows to 0.
    logits = jnp.dot(h.astype(w2_ref.dtype), w2_ref[...],
                     preferred_element_type=jnp.float32) + b2_ref[...]
    # Numerically-stable softmax over the padded, lane-dense feature axis.
    # Exact normalization: the previous approx reciprocal left each row summing
    # to 1 +- ~4e-3, which failed the downstream sum-to-1 check.
    m = jnp.max(logits, axis=-1, keepdims=True)
    e = jnp.exp(logits - m)
    denom = jnp.sum(e, axis=-1, keepdims=True)
    o_ref[...] = (e / denom).astype(o_ref.dtype)


def prepare_params(w1, b1, w2, b2):
    """One-time weight prep (pad + bf16 cast), hoisted out of the forward path.

    w1: (input, hidden); b1: (1, hidden); w2: (hidden, output); b2: (1, output).
    """
    K, H = w1.shape
    O = w2.shape[1]
    Kp, Hp, Op = _pad_feature(K), _pad_feature(H), _pad_feature(O)
    w1_p = jnp.zeros((Kp, Hp), jnp.bfloat16).at[:K, :H].set(w1.astype(jnp.bfloat16))
    b1_p = jnp.zeros((1, Hp), jnp.float32).at[:, :H].set(b1.astype(jnp.float32))
    w2_p = jnp.zeros((Hp, Op), jnp.bfloat16).at[:H, :O].set(w2.astype(jnp.bfloat16))
    # Padded output columns get -1e30 so the f32 softmax epilogue ignores them.
    b2_p = jnp.full((1, Op), NEG_BIG, jnp.float32).at[:, :O].set(b2.astype(jnp.float32))
    return {"w1": w1_p, "b1": b1_p, "w2": w2_p, "b2": b2_p, "dims": (K, H, O)}


def neural_network_forward(x, params):
    """x: (B, input_size) f32; params from prepare_params(). Returns (B, output) f32 probs."""
    # NOTE: at tiny shapes (like the demo below) a fused plain-XLA path beats
    # any kernel -- launch + pad overhead dominates; the Pallas path is the
    # point of this exercise, so it is always taken here.
    K, H, O = params["dims"]
    w1_p, b1_p = params["w1"], params["b1"]
    w2_p, b2_p = params["w2"], params["b2"]
    Kp, Hp = w1_p.shape
    Op = w2_p.shape[1]

    B = x.shape[0]
    Bp = _round_up(B, SUBLANE_BF16)          # bf16 sublane pack: 16 rows
    TB = min(256, Bp)                        # <=256 so v7x's 2 TCs share the grid
    n_tiles = pl.cdiv(Bp, TB)                # ragged last block handled by Pallas

    # Per-call input prep: pad batch to Bp rows / features to Kp lanes, cast bf16.
    x_p = jnp.zeros((Bp, Kp), jnp.bfloat16).at[:B, :K].set(x.astype(jnp.bfloat16))

    # VMEM budget: resident weights/biases (with their buffer multiplicity),
    # double-buffered x/out tiles, f32 h + logits intermediates, plus margin;
    # capped at 40 MiB so it stays safe on v7x's 64 MiB VMEM per TensorCore.
    w1_bytes, w2_bytes = Kp * Hp * 2, Hp * Op * 2
    b1_bytes, b2_bytes = Hp * 4, Op * 4
    resident = sum(_buf_factor(n) * n for n in (w1_bytes, w2_bytes, b1_bytes, b2_bytes))
    per_step = 2 * (TB * Kp * 2 + TB * Op * 2)          # 2x-buffered bf16 tiles
    interm = TB * (Hp + Op) * 4 * 2                     # f32 h + logits (+ slack)
    vmem_limit = int(min(resident + per_step + interm + (8 << 20), 40 << 20))
    # TODO(synk): for hidden sizes where the resident bf16 weights exceed ~24 MiB,
    # add a hidden-dim grid axis marked "arbitrary" with a VMEM f32 accumulator
    # instead of keeping both weight matrices resident (v7x only has 64 MiB VMEM).

    cost = pl.CostEstimate(
        flops=2 * Bp * (Kp * Hp + Hp * Op),
        transcendentals=Bp * Op,
        bytes_accessed=(Bp * Kp * 2 + w1_bytes + w2_bytes
                        + b1_bytes + b2_bytes + Bp * Op * 2),
    )

    out_p = pl.pallas_call(
        mlp_kernel,
        out_shape=jax.ShapeDtypeStruct((Bp, Op), jnp.bfloat16),  # halved writeback
        grid=(n_tiles,),
        in_specs=[
            pl.BlockSpec((TB, Kp), lambda i: (i, 0)),   # x: tiled over batch
            _resident_spec((Kp, Hp), w1_bytes),         # W1: resident
            _resident_spec((1, Hp), b1_bytes),          # b1: resident
            _resident_spec((Hp, Op), w2_bytes),         # W2: resident
            _resident_spec((1, Op), b2_bytes),          # b2 (padded cols = -1e30)
        ],
        out_specs=pl.BlockSpec((TB, Op), lambda i: (i, 0)),  # lane-dense store
        compiler_params=pltpu.CompilerParams(
            dimension_semantics=("parallel",),
            vmem_limit_bytes=vmem_limit,
        ),
        cost_estimate=cost,
    )(x_p, w1_p, b1_p, w2_p, b2_p)

    # Slice away padding (cheap: the padded slab is bf16) and return f32
    # probabilities to match the PyTorch module's output dtype.
    return out_p[:B, :O].astype(jnp.float32)


def init_params(key, input_size, hidden_size, output_size):
    # Mimic nn.Linear default init: U(-1/sqrt(fan_in), 1/sqrt(fan_in)),
    # deterministic via a fixed PRNG key. Weights stored as (in, out).
    k1, k2, k3, k4 = jax.random.split(key, 4)
    bound1 = 1.0 / jnp.sqrt(input_size)
    bound2 = 1.0 / jnp.sqrt(hidden_size)
    w1 = jax.random.uniform(k1, (input_size, hidden_size), jnp.float32,
                            -bound1, bound1)
    b1 = jax.random.uniform(k2, (1, hidden_size), jnp.float32, -bound1, bound1)
    w2 = jax.random.uniform(k3, (hidden_size, output_size), jnp.float32,
                            -bound2, bound2)
    b2 = jax.random.uniform(k4, (1, output_size), jnp.float32, -bound2, bound2)
    return w1, b1, w2, b2


if __name__ == "__main__":
    batch = 8
    input_size = 32
    hidden_size = 64
    output_size = 16

    key = jax.random.PRNGKey(0)
    kx, kp = jax.random.split(key)
    x = jax.random.normal(kx, (batch, input_size), jnp.float32)
    w1, b1, w2, b2 = init_params(kp, input_size, hidden_size, output_size)

    # One-time weight prep (hoisted out of the per-forward path).
    params = prepare_params(w1, b1, w2, b2)

    out = neural_network_forward(x, params)
    out = jax.block_until_ready(out)

    # Sanity check against the pure-f32 JAX reference (same math as the PyTorch
    # module). Tolerances account for bf16 MXU operands and bf16 output storage.
    h_ref = jnp.maximum(x @ w1 + b1, 0.0)
    ref = jax.nn.softmax(h_ref @ w2 + b2, axis=1)
    assert out.shape == (batch, output_size)
    assert out.dtype == jnp.float32
    max_err = float(jnp.max(jnp.abs(out - ref)))
    assert jnp.allclose(out, ref, atol=2e-2, rtol=2e-2), max_err
    # Exact in-kernel normalization; only bf16 output rounding (<~2e-3) remains.
    assert jnp.allclose(jnp.sum(out, axis=1), 1.0, atol=1e-2)

    print("KERNEL_OK")
</pallas_src>

<mosaic_0001>
module attributes {stable_mosaic.version = 11 : i64} {
  func.func @mlp_kernel(%arg0: i32, %arg1: memref<16x128xbf16, #tpu.memory_space<vmem>>, %arg2: memref<128x128xbf16, #tpu.memory_space<vmem>>, %arg3: memref<1x128xf32, #tpu.memory_space<vmem>>, %arg4: memref<128x128xbf16, #tpu.memory_space<vmem>>, %arg5: memref<1x128xf32, #tpu.memory_space<vmem>>, %arg6: memref<16x128xbf16, #tpu.memory_space<vmem>>) attributes {dimension_semantics = [#tpu.dimension_semantics<parallel>], iteration_bounds = array<i64: 1>, scalar_prefetch = 0 : i64, scratch_operands = 0 : i64, tpu.core_type = #tpu.core_type<tc>, window_params = [{transform_indices = @transform_0, window_bounds = array<i64: 16, 128>}, {pipeline_mode = #tpu.pipeline_mode<synchronous>, transform_indices = @transform_1, window_bounds = array<i64: 128, 128>}, {pipeline_mode = #tpu.pipeline_mode<synchronous>, transform_indices = @transform_2, window_bounds = array<i64: 1, 128>}, {pipeline_mode = #tpu.pipeline_mode<synchronous>, transform_indices = @transform_3, window_bounds = array<i64: 128, 128>}, {pipeline_mode = #tpu.pipeline_mode<synchronous>, transform_indices = @transform_4, window_bounds = array<i64: 1, 128>}, {transform_indices = @transform_5, window_bounds = array<i64: 16, 128>}]} {
    %c0 = arith.constant 0 : index
    %c0_0 = arith.constant 0 : index
    %0 = vector.load %arg1[%c0, %c0_0] : memref<16x128xbf16, #tpu.memory_space<vmem>>, vector<16x128xbf16>
    %c0_1 = arith.constant 0 : index
    %c0_2 = arith.constant 0 : index
    %1 = vector.load %arg2[%c0_1, %c0_2] : memref<128x128xbf16, #tpu.memory_space<vmem>>, vector<128x128xbf16>
    %cst = arith.constant dense<0.000000e+00> : vector<16x128xf32>
    %2 = tpu.matmul %0, %1, %cst {dimension_numbers = #tpu.dot_dimension_numbers<[1], [0], [0], [1], [0, 0, 1, 1], [], []>} : vector<16x128xbf16>, vector<128x128xbf16>, vector<16x128xf32> -> vector<16x128xf32>
    %c0_3 = arith.constant 0 : index
    %c0_4 = arith.constant 0 : index
    %3 = vector.load %arg3[%c0_3, %c0_4] : memref<1x128xf32, #tpu.memory_space<vmem>>, vector<1x128xf32>
    %4 = vector.broadcast %3 : vector<1x128xf32> to vector<16x128xf32>
    %5 = arith.addf %2, %4 : vector<16x128xf32>
    %cst_5 = arith.constant 0.000000e+00 : f32
    %6 = vector.broadcast %cst_5 : f32 to vector<16x128xf32>
    %7 = arith.maximumf %5, %6 : vector<16x128xf32>
    %8 = arith.truncf %7 : vector<16x128xf32> to vector<16x128xbf16>
    %c0_6 = arith.constant 0 : index
    %c0_7 = arith.constant 0 : index
    %9 = vector.load %arg4[%c0_6, %c0_7] : memref<128x128xbf16, #tpu.memory_space<vmem>>, vector<128x128xbf16>
    %cst_8 = arith.constant dense<0.000000e+00> : vector<16x128xf32>
    %10 = tpu.matmul %8, %9, %cst_8 {dimension_numbers = #tpu.dot_dimension_numbers<[1], [0], [0], [1], [0, 0, 1, 1], [], []>} : vector<16x128xbf16>, vector<128x128xbf16>, vector<16x128xf32> -> vector<16x128xf32>
    %c0_9 = arith.constant 0 : index
    %c0_10 = arith.constant 0 : index
    %11 = vector.load %arg5[%c0_9, %c0_10] : memref<1x128xf32, #tpu.memory_space<vmem>>, vector<1x128xf32>
    %12 = vector.broadcast %11 : vector<1x128xf32> to vector<16x128xf32>
    %13 = arith.addf %10, %12 : vector<16x128xf32>
    %cst_11 = arith.constant dense<0xFF800000> : vector<16xf32>
    %14 = vector.multi_reduction <maximumf>, %13, %cst_11 [1] : vector<16x128xf32> to vector<16xf32>
    %15 = vector.shape_cast %14 : vector<16xf32> to vector<16x1xf32>
    %16 = vector.broadcast %15 : vector<16x1xf32> to vector<16x128xf32>
    %17 = arith.subf %13, %16 : vector<16x128xf32>
    %18 = math.exp %17 : vector<16x128xf32>
    %cst_12 = arith.constant dense<0.000000e+00> : vector<16xf32>
    %19 = vector.multi_reduction <add>, %18, %cst_12 [1] : vector<16x128xf32> to vector<16xf32>
    %20 = vector.shape_cast %19 : vector<16xf32> to vector<16x1xf32>
    %21 = vector.broadcast %20 : vector<16x1xf32> to vector<16x128xf32>
    %22 = arith.divf %18, %21 : vector<16x128xf32>
    %23 = arith.truncf %22 : vector<16x128xf32> to vector<16x128xbf16>
    %c0_13 = arith.constant 0 : index
    %c0_14 = arith.constant 0 : index
    %24 = vector.load %arg6[%c0_13, %c0_14] : memref<16x128xbf16, #tpu.memory_space<vmem>>, vector<16x128xbf16>
    tpu.vector_store %arg6[%c0_13, %c0_14], %23 {strides = array<i32>} : memref<16x128xbf16, #tpu.memory_space<vmem>>, vector<16x128xbf16>,
    return
  }
  func.func @transform_0(%arg0: i32) -> (i32, i32) {
    %c0_i32 = arith.constant 0 : i32
    %c0_i32_0 = arith.constant 0 : i32
    return %arg0, %c0_i32 : i32, i32
  }
  func.func @transform_1(%arg0: i32) -> (i32, i32) {
    %c0_i32 = arith.constant 0 : i32
    %c0_i32_0 = arith.constant 0 : i32
    %c0_i32_1 = arith.constant 0 : i32
    return %c0_i32, %c0_i32_0 : i32, i32
  }
  func.func @transform_2(%arg0: i32) -> (i32, i32) {
    %c0_i32 = arith.constant 0 : i32
    %c0_i32_0 = arith.constant 0 : i32
    %c0_i32_1 = arith.constant 0 : i32
    return %c0_i32, %c0_i32_0 : i32, i32
  }
  func.func @transform_3(%arg0: i32) -> (i32, i32) {
    %c0_i32 = arith.constant 0 : i32
    %c0_i32_0 = arith.constant 0 : i32
    %c0_i32_1 = arith.constant 0 : i32
    return %c0_i32, %c0_i32_0 : i32, i32
  }
  func.func @transform_4(%arg0: i32) -> (i32, i32) {
    %c0_i32 = arith.constant 0 : i32
    %c0_i32_0 = arith.constant 0 : i32
    %c0_i32_1 = arith.constant 0 : i32
    return %c0_i32, %c0_i32_0 : i32, i32
  }
  func.func @transform_5(%arg0: i32) -> (i32, i32) {
    %c0_i32 = arith.constant 0 : i32
    %c0_i32_0 = arith.constant 0 : i32
    return %arg0, %c0_i32 : i32, i32
  }
}

</mosaic_0001>

<bundles_post_ra>
// kernel: tpu_custom_call.1
= control target key start
LH: loop header
LB: loop body
LE: loop exit
PB: predicated region body
PF: predicated region fallthrough
CT: control target
= control target key end

     0   :  { %10 = vsyncpa [#allocation3], 0  ;;  %s668_s0 = inlined_call_operand.hbm [shape: bf16[16,128], index: 0, kind: input, shape index: {}]   ;;  %s669_s1 = inlined_call_operand.hbm [shape: bf16[128,128], index: 1, kind: input, shape index: {}]   ;;  %s670_s2 = inlined_call_operand.vmem [shape: f32[1,128], index: 2, kind: input, shape index: {}]   ;;  %s671_s3 = inlined_call_operand.hbm [shape: bf16[128,128], index: 3, kind: input, shape index: {}]   ;;  %s672_s4 = inlined_call_operand.vmem [shape: f32[1,128], index: 4, kind: input, shape index: {}]   ;;  %s673_s5 = inlined_call_operand.hbm [shape: bf16[16,128], index: 5, kind: output, shape index: {}]  }
   0x1   :  { %11 = vsyncpa [#allocation6], 0 }
   0x2   :  { %12 = vsyncpa [#allocation4], 0  ;;  %s557_s18 = smov [#allocation5]   ;;  %s558_s20 = smov [#allocation2]  }
   0x3   :  { %s30_s19 = sshll.u32 %s557_s18, 4  ;;  %s18_s21 = sshll.u32 %s558_s20, 4  ;;  %s31_s19 = int_to_ptr.vmem [resolvable:$true] %s30_s19  ;;  %s595_s21 = int_to_ptr.vmem [resolvable:$true] %s18_s21 }
   0x4   :  { %s463_s24 = scalar_lea.hbm %s669_s1, 1024 }
   0x5   :  { %p464_p0 = scmp.ne.s32.totalorder %s669_s1, %s463_s24  ;;  %p467_p1 = scmp.lt.u32.totalorder %s463_s24, %s669_s1 }
   0x7   :  { %p469_p2 = pnand %p467_p1, %p464_p0 }
   0x9   :  { %472 = shalt.err (!%p469_p2)
}
   0xa   :  { %s473_s29 = scalar_lea.vmem %s31_s19, 1024  ;;  %p478_p4 = scmp.lt.s32.totalorder %s31_s19, %s31_s19 }
   0xb   :  { %p474_p3 = scmp.ne.s32.totalorder %s31_s19, %s473_s29  ;;  %p479_p5 = scmp.lt.s32.totalorder %s473_s29, %s473_s29 }
   0xd   :  { %p480_p6 = por %p479_p5, %p478_p4 }
   0xf   :  { %p481_p7 = pnand %p480_p6, %p474_p3 }
  0x11   :  { %484 = shalt.err (!%p481_p7)
}
  0x12   :  { %s559_s30 = smov 64   ;;  %s560_s6 = smov 4  }
  0x13   :  { %36 = dma.hbm_to_vmem [thread:$0]  %s669_s1, 1024, %s31_s19, [#allocation6], %s559_s30, %s559_s30, %s560_s6  }
  0x14   :  { %s485_s11 = scalar_lea.hbm %s668_s0, 128 }
  0x15   :  { %p486_p8 = scmp.ne.s32.totalorder %s668_s0, %s485_s11  ;;  %p489_p9 = scmp.lt.u32.totalorder %s485_s11, %s668_s0 }
  0x17   :  { %p491_p10 = pnand %p489_p9, %p486_p8 }
  0x19   :  { %494 = shalt.err (!%p491_p10)
}
  0x1a   :  { %s495_s16 = scalar_lea.vmem %s595_s21, 128  ;;  %p500_p12 = scmp.lt.s32.totalorder %s595_s21, %s595_s21 }
  0x1b   :  { %p496_p11 = scmp.ne.s32.totalorder %s595_s21, %s495_s16  ;;  %p501_p13 = scmp.lt.s32.totalorder %s495_s16, %s495_s16 }
  0x1d   :  { %p502_p0 = por %p501_p13, %p500_p12 }
  0x1f   :  { %p503_p1 = pnand %p502_p0, %p496_p11 }
  0x21   :  { %506 = shalt.err (!%p503_p1)
}
  0x22   :  { %24 = dma.hbm_to_vmem [thread:$0]  %s668_s0, 128, %s595_s21, [#allocation3], %s559_s30, %s559_s30, %s560_s6  }
  0x23   :  { %s561_s18 = smov [#allocation7]   ;;  %s507_s23 = scalar_lea.hbm %s671_s3, 1024 }
  0x24   :  { %s44_s19 = sshll.u32 %s561_s18, 4  ;;  %p508_p2 = scmp.ne.s32.totalorder %s671_s3, %s507_s23  ;;  %s45_s19 = int_to_ptr.vmem [resolvable:$true] %s44_s19 }
  0x25   :  { %p511_p3 = scmp.lt.u32.totalorder %s507_s23, %s671_s3 }
  0x27   :  { %p513_p4 = pnand %p511_p3, %p508_p2 }
  0x29   :  { %516 = shalt.err (!%p513_p4)
}
  0x2a   :  { %s517_s28 = scalar_lea.vmem %s45_s19, 1024  ;;  %p522_p6 = scmp.lt.s32.totalorder %s45_s19, %s45_s19 }
  0x2b   :  { %p518_p5 = scmp.ne.s32.totalorder %s45_s19, %s517_s28  ;;  %p523_p7 = scmp.lt.s32.totalorder %s517_s28, %s517_s28 }
  0x2d   :  { %p524_p8 = por %p523_p7, %p522_p6 }
  0x2f   :  { %p525_p9 = pnand %p524_p8, %p518_p5 }
  0x31   :  { %528 = shalt.err (!%p525_p9)
}
  0x32   :  { %50 = dma.hbm_to_vmem [thread:$0]  %s671_s3, 1024, %s45_s19, [#allocation6], %s559_s30, %s559_s30, %s560_s6  }
  0x33   :  { %551 = dma.done.wait [#allocation3], 128  }
  0x34   :  { %552 = vsyncadd [#allocation3], 4294967168 }
  0x35   :  { %553 = dma.done.wait [#allocation6], 2048  }
  0x36   :  { %554 = vsyncadd [#allocation6], 4294965248  ;;  %v562_v0 = vmov 0.0   ;;  %vm563_vm0 = vmmov 0   ;;  %v438_v1 = vld [vmem:[#allocation5] sm:$0xff]   ;;  %v439_v2 = vld [vmem:[#allocation5 + $0x8] sm:$0xff]  }
  0x37   :  { %390 = vmatprep.subr.bf16.mxu0 %v562_v0  ;;  %406 = vmatprep.mubr.msk.bf16.mxu0 %vm563_vm0, %v562_v0  ;;  %v440_v3 = vld [vmem:[#allocation5 + $0x10] sm:$0xff]   ;;  %v447_v4 = vld [vmem:[#allocation7] sm:$0xff]   ;;  %v441_v5 = vld [vmem:[#allocation5 + $0x18] sm:$0xff]  }
  0x38   :  { %410 = vmatprep.subr.bf16.mxu1 %v562_v0  ;;  %426 = vmatprep.mubr.msk.bf16.mxu1 %vm563_vm0, %v562_v0  ;;  %v448_v6 = vld [vmem:[#allocation7 + $0x8] sm:$0xff]   ;;  %v442_v7 = vld [vmem:[#allocation5 + $0x20] sm:$0xff]   ;;  %v449_v8 = vld [vmem:[#allocation7 + $0x10] sm:$0xff]  }
  0x39   :  { %391 = vmatpush3.bf16.msra.mxu0 %v438_v1  ;;  %411 = vmatpush3.bf16.msra.mxu1 %v447_v4  ;;  %v443_v9 = vld [vmem:[#allocation5 + $0x28] sm:$0xff]   ;;  %v450_v10 = vld [vmem:[#allocation7 + $0x18] sm:$0xff]   ;;  %v444_v11 = vld [vmem:[#allocation5 + $0x30] sm:$0xff]  }
  0x3a   :  { %392 = vmatprep.subr.bf16.mxu0 %v562_v0  ;;  %412 = vmatprep.subr.bf16.mxu1 %v562_v0  ;;  %v451_v12 = vld [vmem:[#allocation7 + $0x20] sm:$0xff]   ;;  %v445_v13 = vld [vmem:[#allocation5 + $0x38] sm:$0xff]   ;;  %v452_v14 = vld [vmem:[#allocation7 + $0x28] sm:$0xff]  }
  0x3b   :  { %v446_v15 = vld [vmem:[#allocation2] sm:$0xff]   ;;  %v453_v16 = vld [vmem:[#allocation7 + $0x30] sm:$0xff]  }
  0x3c   :  { %v454_v17 = vld [vmem:[#allocation7 + $0x38] sm:$0xff]  }
  0x3d   :  { %393 = vmatpush3.bf16.msra.mxu0 %v439_v2  ;;  %413 = vmatpush3.bf16.msra.mxu1 %v448_v6  ;;  %v344_v18 = vld [vmem:[%s670_s2] ss:$0 sm:$0xff]  ;;  %s564_s2 = smov [#allocation8]  }
  0x3e   :  { %394 = vmatprep.subr.bf16.mxu0 %v562_v0  ;;  %414 = vmatprep.subr.bf16.mxu1 %v562_v0  ;;  %v354_v28 = vld [vmem:[%s672_s4] ss:$0 sm:$0xff]  ;;  %s331_s4 = sshll.u32 %s564_s2, 4  ;;  %s332_s4 = int_to_ptr.vmem [resolvable:$true] %s331_s4 }
  0x3f   :  { %s529_s9 = scalar_lea.vmem %s332_s4, 128  ;;  %p534_p11 = scmp.lt.s32.totalorder %s332_s4, %s332_s4 }
  0x40   :  { %p530_p10 = scmp.ne.s32.totalorder %s332_s4, %s529_s9  ;;  %p535_p12 = scmp.lt.s32.totalorder %s529_s9, %s529_s9 }
  0x41   :  { %395 = vmatpush3.bf16.msra.mxu0 %v440_v3  ;;  %415 = vmatpush3.bf16.msra.mxu1 %v449_v8 }
  0x42   :  { %396 = vmatprep.subr.bf16.mxu0 %v562_v0  ;;  %416 = vmatprep.subr.bf16.mxu1 %v562_v0  ;;  %p536_p13 = por %p535_p12, %p534_p11 }
  0x44   :  { %p537_p0 = pnand %p536_p13, %p530_p10 }
  0x45   :  { %397 = vmatpush3.bf16.msra.mxu0 %v441_v5  ;;  %417 = vmatpush3.bf16.msra.mxu1 %v450_v10 }
  0x46   :  { %398 = vmatprep.subr.bf16.mxu0 %v562_v0  ;;  %418 = vmatprep.subr.bf16.mxu1 %v562_v0 }
  0x49   :  { %399 = vmatpush3.bf16.msra.mxu0 %v442_v7  ;;  %419 = vmatpush3.bf16.msra.mxu1 %v451_v12 }
  0x4a   :  { %400 = vmatprep.subr.bf16.mxu0 %v562_v0  ;;  %420 = vmatprep.subr.bf16.mxu1 %v562_v0 }
  0x4d   :  { %401 = vmatpush3.bf16.msra.mxu0 %v443_v9  ;;  %421 = vmatpush3.bf16.msra.mxu1 %v452_v14 }
  0x4e   :  { %402 = vmatprep.subr.bf16.mxu0 %v562_v0  ;;  %422 = vmatprep.subr.bf16.mxu1 %v562_v0 }
  0x51   :  { %403 = vmatpush3.bf16.msra.mxu0 %v444_v11  ;;  %423 = vmatpush3.bf16.msra.mxu1 %v453_v16 }
  0x52   :  { %404 = vmatprep.subr.bf16.mxu0 %v562_v0  ;;  %424 = vmatprep.subr.bf16.mxu1 %v562_v0 }
  0x55   :  { %405 = vmatpush3.bf16.msra.mxu0 %v445_v13  ;;  %425 = vmatpush3.bf16.msra.mxu1 %v454_v17 }
  0x58   :  { %407 = vmatmul.mubr.bf16.vlgmr.msra.gmra.mrb[0].mxu0 %v446_v15 }
 0x12b   :  { %v176_v19 = vpop.f32.mrb[0].mxu0 }
 0x12c   :  { %v177_v20 = vadd.f32 %v344_v18, %v176_v19  ;;  %v408_v21 = vpop.f32.mrb[1].mxu0 }
 0x12d   :  { %v179_v22 = vpop.f32.mrb[2].mxu0 }
 0x12e   :  { %v180_v23 = vadd.f32 %v344_v18, %v179_v22  ;;  %v409_v24 = vpop.f32.mrb[3].mxu0  ;;  %v183_v25 = vmax.f32 %v177_v20, 0.0 }
 0x130   :  { %v184_v26 = vmax.f32 %v180_v23, 0.0 }
 0x132   :  { %v185_v27 = vpack.c.bf16 %v184_v26, %v183_v25 }
 0x134   :  { %427 = vmatmul.mubr.bf16.vlgmr.msra.gmra.mrb[0].mxu1 %v185_v27 }
 0x207   :  { %v291_v29 = vpop.f32.mrb[0].mxu1 }
 0x208   :  { %v292_v30 = vadd.f32 %v354_v28, %v291_v29  ;;  %v428_v31 = vpop.f32.mrb[1].mxu1 }
 0x209   :  { %v294_v32 = vpop.f32.mrb[2].mxu1 }
 0x20a   :  { %298 = vmax.xlane.f32.xlu0 %v292_v30  ;;  %v429_v33 = vpop.f32.mrb[3].mxu1  ;;  %v295_v34 = vadd.f32 %v354_v28, %v294_v32 }
 0x20e   :  { %300 = vmax.xlane.f32.xlu0 %v295_v34 }
 0x297   :  { %v299_v35 = vpop.xlane.xlu0 %298 }
 0x298   :  { %v302_v36 = vsub.f32 %v292_v30, %v299_v35 }
 0x29a   :  { %v304_v37 = vmul.f32 1.442695, %v302_v36 }
 0x29b   :  { %v301_v38 = vpop.xlane.xlu0 %300 }
 0x29c   :  { %455 = vpow2.f32 %v304_v37  ;;  %v303_v39 = vsub.f32 %v295_v34, %v301_v38 }
 0x29e   :  { %v306_v40 = vmul.f32 1.442695, %v303_v39 }
 0x2a0   :  { %457 = vpow2.f32 %v306_v40 }
 0x2a6   :  { %v456_v41 = vpop.eup %455 }
 0x2a7   :  { %308 = vadd.xlane.f32.xlu1 %v456_v41 }
 0x2aa   :  { %v458_v42 = vpop.eup %457 }
 0x2ab   :  { %310 = vadd.xlane.f32.xlu1 %v458_v42 }
 0x334   :  { %v309_v43 = vpop.xlane.xlu1 %308 }
 0x335   :  { %459 = vrcp.f32 %v309_v43 }
 0x338   :  { %v311_v44 = vpop.xlane.xlu1 %310 }
 0x339   :  { %461 = vrcp.f32 %v311_v44 }
 0x33f   :  { %v460_v45 = vpop.eup %459 }
 0x340   :  { %v313_v47 = vmul.f32 %v460_v45, %v456_v41 }
 0x343   :  { %v462_v46 = vpop.eup %461 }
 0x344   :  { %v315_v48 = vmul.f32 %v462_v46, %v458_v42 }
 0x346   :  { %v370_v49 = vpack.c.bf16 %v315_v48, %v313_v47 }
 0x348   :  { %371 = vst [vmem:[#allocation8] sm:$0xff] %v370_v49  }
 0x349   :  { %540 = shalt.err (!%p537_p0)
}
 0x34a   :  { %s541_s12 = scalar_lea.hbm %s673_s5, 128 }
 0x34b   :  { %p542_p1 = scmp.ne.s32.totalorder %s673_s5, %s541_s12  ;;  %p545_p2 = scmp.lt.u32.totalorder %s541_s12, %s673_s5 }
 0x34d   :  { %p547_p3 = pnand %p545_p2, %p542_p1 }
 0x34f   :  { %550 = shalt.err (!%p547_p3)
}
 0x350   :  { %337 = dma.vmem_to_hbm [thread:$0]  %s332_s4, 128, %s673_s5, [#allocation4], %s559_s30, %s559_s30, %s560_s6  }
 0x351   :  { %555 = dma.done.wait [#allocation4], 128  }
 0x352   :  { %556 = vsyncadd [#allocation4], 4294967168 }
 0x353   :  { %341 = vsyncpa [#allocation3], 1 }
 0x354   :  { %342 = vsyncpa [#allocation6], 1 }
 0x355   :  { %343 = vsyncpa [#allocation4], 1 }

</bundles_post_ra>
